<compile_context>
chip_gen: v7x
topology: tpu7x:2x2x1
jax: 0.10.0
libtpu: 0.0.40
codegen_flags: <defaults>
</compile_context>

<pallas_src>
import jax
import jax.numpy as jnp
from jax.experimental import pallas as pl
from jax.experimental.pallas import tpu as pltpu


def _mlp_kernel(x_ref,
                w1_ref, b1_ref, w2_ref, b2_ref, w3_ref, b3_ref,
                w4_ref, b4_ref, wo_ref, bo_ref,
                o_ref):
    """Whole (BN-folded) MLP forward for one batch tile, entirely in VMEM.

    Matmuls take bf16 operands and accumulate in f32 on the MXU; bias add +
    ReLU happen on the f32 accumulator (VPU) and the result is re-cast to
    bf16 to feed the next matmul.
    """
    def layer(h, w_ref, b_ref):
        a = jnp.dot(h, w_ref[...], preferred_element_type=jnp.float32)
        a = jnp.maximum(a + b_ref[...], 0.0)
        return a.astype(jnp.bfloat16)

    h = layer(x_ref[...], w1_ref, b1_ref)   # layer_1 + ReLU (BN1 folded into layer_2)
    h = layer(h, w2_ref, b2_ref)            # layer_2 + ReLU (BN2 folded into layer_3)
    h = layer(h, w3_ref, b3_ref)            # layer_3 + ReLU (BN3 folded into layer_4)
    h = layer(h, w4_ref, b4_ref)            # layer_4 + ReLU (BN4 folded into layer_out)

    # dropout(p=0.1): identity in eval/inference mode.
    # TODO(synk): training-mode dropout (random mask) intentionally not emulated.

    # layer_out -> softmax over the class (last) axis
    logits = jnp.dot(h, wo_ref[...], preferred_element_type=jnp.float32) + bo_ref[...]
    m = jnp.max(logits, axis=-1, keepdims=True)
    e = jnp.exp(logits - m)
    denom = jnp.sum(e, axis=-1, keepdims=True)
    o_ref[...] = (e * pl.reciprocal(denom, approx=True)).astype(o_ref.dtype)


def fold_bn_into_linear(params):
    """Fold eval-mode BatchNorm1d (scale s, shift t, applied after ReLU) into the
    *following* Linear: (h*s + t) @ W + b == h @ (diag(s)@W) + (t@W + b). Exact."""
    f = {"w1": params["w1"], "b1": params["b1"]}
    for prev, cur in (("1", "2"), ("2", "3"), ("3", "4"), ("4", "o")):
        s = params[f"s{prev}"]              # (1, F)
        t = params[f"t{prev}"]              # (1, F)
        w = params[f"w{cur}"]               # (F, F_next)
        b = params[f"b{cur}"]               # (1, F_next)
        f[f"w{cur}"] = s.reshape(-1, 1) * w
        f[f"b{cur}"] = b + t @ w
    return f


def _pick_batch_tile(B):
    # Fill the MXU M dimension and amortize the ~0.35us per-grid-step overhead.
    # Tiles are capped at 256 rows so the (tile, 200) f32 accumulator passes stay
    # clear of vreg/VMEM pressure on every generation (incl. v7x's 64 MiB VMEM).
    if B <= 256:
        return B                       # tiny batch: one grid step
    for t in (256, 128):
        if B % t == 0:
            return t                   # >=2 "parallel" steps -> both v7x TCs busy
    return 256                         # non-divisible batch: pad up to a multiple


def mlp_forward(x, params, *, batch_tile=None, lane_pad_output=None):
    """x: (B, input_dim) float32. Returns (B, output_class) float32 softmax probs."""
    B, in_dim = x.shape
    folded = fold_bn_into_linear(params)
    out_dim = folded["wo"].shape[1]

    if batch_tile is None:
        batch_tile = _pick_batch_tile(B)
    n_tiles = -(-B // batch_tile)
    B_pad = n_tiles * batch_tile

    # Lane-dense output (unmasked vst) only pays off for large batches. Padded
    # classes get weight 0 / bias -1e30, so softmax over real classes is unchanged;
    # the wrapper slices them off.
    if lane_pad_output is None:
        lane_pad_output = B_pad >= 1024
    out_dim_k = 128 * (-(-out_dim // 128)) if lane_pad_output else out_dim

    wo, bo = folded["wo"], folded["bo"]
    if out_dim_k != out_dim:
        wo = jnp.pad(wo, ((0, 0), (0, out_dim_k - out_dim)))
        bo = jnp.pad(bo, ((0, 0), (0, out_dim_k - out_dim)), constant_values=-1e30)

    # bf16 weights (2x MXU throughput, half the HBM->VMEM bytes); f32 biases are
    # added straight onto the f32 MXU accumulator.
    ordered = [
        folded["w1"].astype(jnp.bfloat16), folded["b1"].astype(jnp.float32),
        folded["w2"].astype(jnp.bfloat16), folded["b2"].astype(jnp.float32),
        folded["w3"].astype(jnp.bfloat16), folded["b3"].astype(jnp.float32),
        folded["w4"].astype(jnp.bfloat16), folded["b4"].astype(jnp.float32),
        wo.astype(jnp.bfloat16), bo.astype(jnp.float32),
    ]

    xb = x.astype(jnp.bfloat16)
    if B_pad != B:
        xb = jnp.pad(xb, ((0, B_pad - B), (0, 0)))

    def full_spec(arr):
        # whole (small) parameter resident for every grid step
        return pl.BlockSpec(arr.shape, lambda i: (0, 0))

    in_specs = [pl.BlockSpec((batch_tile, in_dim), lambda i: (i, 0))]
    in_specs += [full_spec(a) for a in ordered]
    out_spec = pl.BlockSpec((batch_tile, out_dim_k), lambda i: (i, 0))

    out = pl.pallas_call(
        _mlp_kernel,
        out_shape=jax.ShapeDtypeStruct((B_pad, out_dim_k), jnp.float32),
        grid=(n_tiles,),
        in_specs=in_specs,
        out_specs=out_spec,
        compiler_params=pltpu.CompilerParams(
            dimension_semantics=("parallel",),   # batch axis shards over v7x's 2 TCs
            vmem_limit_bytes=32 * 1024 * 1024,   # guardrail; actual footprint ~1 MiB
        ),
    )(xb, *ordered)

    if B_pad != B or out_dim_k != out_dim:
        out = out[:B, :out_dim]
    return out


def init_params(key, input_dim, output_class):
    """Deterministic parameter init mirroring the PyTorch module shapes."""
    dims = [(input_dim, 200), (200, 100), (100, 200), (200, 50), (50, output_class)]
    names = ["1", "2", "3", "4", "o"]
    params = {}
    eps = 1e-5
    for (fan_in, fan_out), name in zip(dims, names):
        key, kw, kb = jax.random.split(key, 3)
        bound = 1.0 / jnp.sqrt(jnp.float32(fan_in))
        # stored as (in, out) so the kernel does x @ W
        params[f"w{name}"] = jax.random.uniform(
            kw, (fan_in, fan_out), jnp.float32, -bound, bound)
        params[f"b{name}"] = jax.random.uniform(
            kb, (1, fan_out), jnp.float32, -bound, bound)
        if name != "o":
            # BatchNorm1d(fan_out) in eval mode: fold running stats + affine
            key, kg, kbeta, km, kv = jax.random.split(key, 5)
            gamma = 1.0 + 0.1 * jax.random.normal(kg, (1, fan_out), jnp.float32)
            beta = 0.1 * jax.random.normal(kbeta, (1, fan_out), jnp.float32)
            rmean = 0.1 * jax.random.normal(km, (1, fan_out), jnp.float32)
            rvar = 1.0 + 0.1 * jax.random.uniform(kv, (1, fan_out), jnp.float32)
            scale = gamma / jnp.sqrt(rvar + eps)
            shift = beta - rmean * scale
            params[f"s{name}"] = scale
            params[f"t{name}"] = shift
    return params


def ref_f32(x, p):
    """Pure-f32, unfolded reference (Linear -> ReLU -> BN, eval mode)."""
    h = jnp.maximum(x @ p["w1"] + p["b1"], 0.0) * p["s1"] + p["t1"]
    h = jnp.maximum(h @ p["w2"] + p["b2"], 0.0) * p["s2"] + p["t2"]
    h = jnp.maximum(h @ p["w3"] + p["b3"], 0.0) * p["s3"] + p["t3"]
    h = jnp.maximum(h @ p["w4"] + p["b4"], 0.0) * p["s4"] + p["t4"]
    return jax.nn.softmax(h @ p["wo"] + p["bo"], axis=-1)


def ref_mimic(x, folded):
    """Pure-JAX reference mirroring the kernel numerics: BN folded, bf16
    operands, f32 accumulation, bf16 inter-layer activations."""
    def bf(a):
        return a.astype(jnp.bfloat16).astype(jnp.float32)
    h = bf(x)
    for name in ("1", "2", "3", "4"):
        h = jnp.maximum(h @ bf(folded[f"w{name}"]) + folded[f"b{name}"], 0.0)
        h = bf(h)
    logits = h @ bf(folded["wo"]) + folded["bo"]
    return jax.nn.softmax(logits, axis=-1)


if __name__ == "__main__":
    input_dim = 32
    output_class = 8
    batch = 16

    key = jax.random.PRNGKey(0)
    key, kx = jax.random.split(key)
    x = jax.random.normal(kx, (batch, input_dim), jnp.float32)
    params = init_params(key, input_dim, output_class)
    folded = fold_bn_into_linear(params)

    # main path: tiny batch -> single grid step, natural output width
    out = jax.block_until_ready(mlp_forward(x, params))
    assert out.shape == (batch, output_class)
    assert out.dtype == jnp.float32

    # also exercise the lane-dense output path used for very large batches
    out_lane = jax.block_until_ready(mlp_forward(x, params, lane_pad_output=True))
    assert out_lane.shape == (batch, output_class)

    # and a bigger, non-divisible batch -> multi-step "parallel" grid + row padding
    key, kx2 = jax.random.split(key)
    x2 = jax.random.normal(kx2, (300, input_dim), jnp.float32)
    out2 = jax.block_until_ready(mlp_forward(x2, params))
    assert out2.shape == (300, output_class)

    # tight check vs a reference with identical (bf16/f32-acc) numerics
    exp_tight = ref_mimic(x, folded)
    assert jnp.allclose(out, exp_tight, atol=5e-3, rtol=5e-3)
    assert jnp.allclose(out_lane, exp_tight, atol=5e-3, rtol=5e-3)
    assert jnp.allclose(out2, ref_mimic(x2, folded), atol=5e-3, rtol=5e-3)

    # loose sanity check vs the full-f32, unfolded BN reference (bf16 quantization)
    assert jnp.allclose(out, ref_f32(x, params), atol=5e-2)

    # softmax rows sum to ~1 (approx reciprocal allows a tiny deviation)
    assert jnp.allclose(jnp.sum(out, axis=-1), 1.0, atol=1e-2)
    assert jnp.allclose(jnp.sum(out2, axis=-1), 1.0, atol=1e-2)

    print("KERNEL_OK")
</pallas_src>

<mosaic_0001>
module attributes {stable_mosaic.version = 11 : i64} {
  func.func @_mlp_kernel(%arg0: i32, %arg1: memref<16x32xbf16, #tpu.memory_space<vmem>>, %arg2: memref<32x200xbf16, #tpu.memory_space<vmem>>, %arg3: memref<1x200xf32, #tpu.memory_space<vmem>>, %arg4: memref<200x100xbf16, #tpu.memory_space<vmem>>, %arg5: memref<1x100xf32, #tpu.memory_space<vmem>>, %arg6: memref<100x200xbf16, #tpu.memory_space<vmem>>, %arg7: memref<1x200xf32, #tpu.memory_space<vmem>>, %arg8: memref<200x50xbf16, #tpu.memory_space<vmem>>, %arg9: memref<1x50xf32, #tpu.memory_space<vmem>>, %arg10: memref<50x8xbf16, #tpu.memory_space<vmem>>, %arg11: memref<1x8xf32, #tpu.memory_space<vmem>>, %arg12: memref<16x8xf32, #tpu.memory_space<vmem>>) attributes {dimension_semantics = [#tpu.dimension_semantics<parallel>], iteration_bounds = array<i64: 1>, scalar_prefetch = 0 : i64, scratch_operands = 0 : i64, tpu.core_type = #tpu.core_type<tc>, window_params = [{transform_indices = @transform_0, window_bounds = array<i64: 16, 32>}, {pipeline_mode = #tpu.pipeline_mode<synchronous>, transform_indices = @transform_1, window_bounds = array<i64: 32, 200>}, {pipeline_mode = #tpu.pipeline_mode<synchronous>, transform_indices = @transform_2, window_bounds = array<i64: 1, 200>}, {pipeline_mode = #tpu.pipeline_mode<synchronous>, transform_indices = @transform_3, window_bounds = array<i64: 200, 100>}, {pipeline_mode = #tpu.pipeline_mode<synchronous>, transform_indices = @transform_4, window_bounds = array<i64: 1, 100>}, {pipeline_mode = #tpu.pipeline_mode<synchronous>, transform_indices = @transform_5, window_bounds = array<i64: 100, 200>}, {pipeline_mode = #tpu.pipeline_mode<synchronous>, transform_indices = @transform_6, window_bounds = array<i64: 1, 200>}, {pipeline_mode = #tpu.pipeline_mode<synchronous>, transform_indices = @transform_7, window_bounds = array<i64: 200, 50>}, {pipeline_mode = #tpu.pipeline_mode<synchronous>, transform_indices = @transform_8, window_bounds = array<i64: 1, 50>}, {pipeline_mode = #tpu.pipeline_mode<synchronous>, transform_indices = @transform_9, window_bounds = array<i64: 50, 8>}, {pipeline_mode = #tpu.pipeline_mode<synchronous>, transform_indices = @transform_10, window_bounds = array<i64: 1, 8>}, {transform_indices = @transform_11, window_bounds = array<i64: 16, 8>}]} {
    %c0 = arith.constant 0 : index
    %c0_0 = arith.constant 0 : index
    %0 = vector.load %arg1[%c0, %c0_0] : memref<16x32xbf16, #tpu.memory_space<vmem>>, vector<16x32xbf16>
    %c0_1 = arith.constant 0 : index
    %c0_2 = arith.constant 0 : index
    %1 = vector.load %arg2[%c0_1, %c0_2] : memref<32x200xbf16, #tpu.memory_space<vmem>>, vector<32x200xbf16>
    %cst = arith.constant dense<0.000000e+00> : vector<16x200xf32>
    %2 = tpu.matmul %0, %1, %cst {dimension_numbers = #tpu.dot_dimension_numbers<[1], [0], [0], [1], [0, 0, 1, 1], [], []>} : vector<16x32xbf16>, vector<32x200xbf16>, vector<16x200xf32> -> vector<16x200xf32>
    %c0_3 = arith.constant 0 : index
    %c0_4 = arith.constant 0 : index
    %3 = vector.load %arg3[%c0_3, %c0_4] : memref<1x200xf32, #tpu.memory_space<vmem>>, vector<1x200xf32>
    %4 = vector.broadcast %3 : vector<1x200xf32> to vector<16x200xf32>
    %5 = arith.addf %2, %4 : vector<16x200xf32>
    %cst_5 = arith.constant 0.000000e+00 : f32
    %6 = vector.broadcast %cst_5 : f32 to vector<16x200xf32>
    %7 = arith.maximumf %5, %6 : vector<16x200xf32>
    %8 = arith.truncf %7 : vector<16x200xf32> to vector<16x200xbf16>
    %c0_6 = arith.constant 0 : index
    %c0_7 = arith.constant 0 : index
    %9 = vector.load %arg4[%c0_6, %c0_7] : memref<200x100xbf16, #tpu.memory_space<vmem>>, vector<200x100xbf16>
    %cst_8 = arith.constant dense<0.000000e+00> : vector<16x100xf32>
    %10 = tpu.matmul %8, %9, %cst_8 {dimension_numbers = #tpu.dot_dimension_numbers<[1], [0], [0], [1], [0, 0, 1, 1], [], []>} : vector<16x200xbf16>, vector<200x100xbf16>, vector<16x100xf32> -> vector<16x100xf32>
    %c0_9 = arith.constant 0 : index
    %c0_10 = arith.constant 0 : index
    %11 = vector.load %arg5[%c0_9, %c0_10] : memref<1x100xf32, #tpu.memory_space<vmem>>, vector<1x100xf32>
    %12 = vector.broadcast %11 : vector<1x100xf32> to vector<16x100xf32>
    %13 = arith.addf %10, %12 : vector<16x100xf32>
    %cst_11 = arith.constant 0.000000e+00 : f32
    %14 = vector.broadcast %cst_11 : f32 to vector<16x100xf32>
    %15 = arith.maximumf %13, %14 : vector<16x100xf32>
    %16 = arith.truncf %15 : vector<16x100xf32> to vector<16x100xbf16>
    %c0_12 = arith.constant 0 : index
    %c0_13 = arith.constant 0 : index
    %17 = vector.load %arg6[%c0_12, %c0_13] : memref<100x200xbf16, #tpu.memory_space<vmem>>, vector<100x200xbf16>
    %cst_14 = arith.constant dense<0.000000e+00> : vector<16x200xf32>
    %18 = tpu.matmul %16, %17, %cst_14 {dimension_numbers = #tpu.dot_dimension_numbers<[1], [0], [0], [1], [0, 0, 1, 1], [], []>} : vector<16x100xbf16>, vector<100x200xbf16>, vector<16x200xf32> -> vector<16x200xf32>
    %c0_15 = arith.constant 0 : index
    %c0_16 = arith.constant 0 : index
    %19 = vector.load %arg7[%c0_15, %c0_16] : memref<1x200xf32, #tpu.memory_space<vmem>>, vector<1x200xf32>
    %20 = vector.broadcast %19 : vector<1x200xf32> to vector<16x200xf32>
    %21 = arith.addf %18, %20 : vector<16x200xf32>
    %cst_17 = arith.constant 0.000000e+00 : f32
    %22 = vector.broadcast %cst_17 : f32 to vector<16x200xf32>
    %23 = arith.maximumf %21, %22 : vector<16x200xf32>
    %24 = arith.truncf %23 : vector<16x200xf32> to vector<16x200xbf16>
    %c0_18 = arith.constant 0 : index
    %c0_19 = arith.constant 0 : index
    %25 = vector.load %arg8[%c0_18, %c0_19] : memref<200x50xbf16, #tpu.memory_space<vmem>>, vector<200x50xbf16>
    %cst_20 = arith.constant dense<0.000000e+00> : vector<16x50xf32>
    %26 = tpu.matmul %24, %25, %cst_20 {dimension_numbers = #tpu.dot_dimension_numbers<[1], [0], [0], [1], [0, 0, 1, 1], [], []>} : vector<16x200xbf16>, vector<200x50xbf16>, vector<16x50xf32> -> vector<16x50xf32>
    %c0_21 = arith.constant 0 : index
    %c0_22 = arith.constant 0 : index
    %27 = vector.load %arg9[%c0_21, %c0_22] : memref<1x50xf32, #tpu.memory_space<vmem>>, vector<1x50xf32>
    %28 = vector.broadcast %27 : vector<1x50xf32> to vector<16x50xf32>
    %29 = arith.addf %26, %28 : vector<16x50xf32>
    %cst_23 = arith.constant 0.000000e+00 : f32
    %30 = vector.broadcast %cst_23 : f32 to vector<16x50xf32>
    %31 = arith.maximumf %29, %30 : vector<16x50xf32>
    %32 = arith.truncf %31 : vector<16x50xf32> to vector<16x50xbf16>
    %c0_24 = arith.constant 0 : index
    %c0_25 = arith.constant 0 : index
    %33 = vector.load %arg10[%c0_24, %c0_25] : memref<50x8xbf16, #tpu.memory_space<vmem>>, vector<50x8xbf16>
    %cst_26 = arith.constant dense<0.000000e+00> : vector<16x8xf32>
    %34 = tpu.matmul %32, %33, %cst_26 {dimension_numbers = #tpu.dot_dimension_numbers<[1], [0], [0], [1], [0, 0, 1, 1], [], []>} : vector<16x50xbf16>, vector<50x8xbf16>, vector<16x8xf32> -> vector<16x8xf32>
    %c0_27 = arith.constant 0 : index
    %c0_28 = arith.constant 0 : index
    %35 = vector.load %arg11[%c0_27, %c0_28] : memref<1x8xf32, #tpu.memory_space<vmem>>, vector<1x8xf32>
    %36 = vector.broadcast %35 : vector<1x8xf32> to vector<16x8xf32>
    %37 = arith.addf %34, %36 : vector<16x8xf32>
    %cst_29 = arith.constant dense<0xFF800000> : vector<16xf32>
    %38 = vector.multi_reduction <maximumf>, %37, %cst_29 [1] : vector<16x8xf32> to vector<16xf32>
    %39 = vector.shape_cast %38 : vector<16xf32> to vector<16x1xf32>
    %40 = vector.broadcast %39 : vector<16x1xf32> to vector<16x8xf32>
    %41 = arith.subf %37, %40 : vector<16x8xf32>
    %42 = math.exp %41 : vector<16x8xf32>
    %cst_30 = arith.constant dense<0.000000e+00> : vector<16xf32>
    %43 = vector.multi_reduction <add>, %42, %cst_30 [1] : vector<16x8xf32> to vector<16xf32>
    %44 = vector.shape_cast %43 : vector<16xf32> to vector<16x1xf32>
    %45 = tpu.reciprocal %44 {approx = true} : vector<16x1xf32> -> vector<16x1xf32>
    %46 = vector.broadcast %45 : vector<16x1xf32> to vector<16x8xf32>
    %47 = arith.mulf %42, %46 : vector<16x8xf32>
    %c0_31 = arith.constant 0 : index
    %c0_32 = arith.constant 0 : index
    %48 = vector.load %arg12[%c0_31, %c0_32] : memref<16x8xf32, #tpu.memory_space<vmem>>, vector<16x8xf32>
    tpu.vector_store %arg12[%c0_31, %c0_32], %47 {strides = array<i32>} : memref<16x8xf32, #tpu.memory_space<vmem>>, vector<16x8xf32>,
    return
  }
  func.func @transform_0(%arg0: i32) -> (i32, i32) {
    %c0_i32 = arith.constant 0 : i32
    %c0_i32_0 = arith.constant 0 : i32
    return %arg0, %c0_i32 : i32, i32
  }
  func.func @transform_1(%arg0: i32) -> (i32, i32) {
    %c0_i32 = arith.constant 0 : i32
    %c0_i32_0 = arith.constant 0 : i32
    %c0_i32_1 = arith.constant 0 : i32
    return %c0_i32, %c0_i32_0 : i32, i32
  }
  func.func @transform_2(%arg0: i32) -> (i32, i32) {
    %c0_i32 = arith.constant 0 : i32
    %c0_i32_0 = arith.constant 0 : i32
    %c0_i32_1 = arith.constant 0 : i32
    return %c0_i32, %c0_i32_0 : i32, i32
  }
  func.func @transform_3(%arg0: i32) -> (i32, i32) {
    %c0_i32 = arith.constant 0 : i32
    %c0_i32_0 = arith.constant 0 : i32
    %c0_i32_1 = arith.constant 0 : i32
    return %c0_i32, %c0_i32_0 : i32, i32
  }
  func.func @transform_4(%arg0: i32) -> (i32, i32) {
    %c0_i32 = arith.constant 0 : i32
    %c0_i32_0 = arith.constant 0 : i32
    %c0_i32_1 = arith.constant 0 : i32
    return %c0_i32, %c0_i32_0 : i32, i32
  }
  func.func @transform_5(%arg0: i32) -> (i32, i32) {
    %c0_i32 = arith.constant 0 : i32
    %c0_i32_0 = arith.constant 0 : i32
    %c0_i32_1 = arith.constant 0 : i32
    return %c0_i32, %c0_i32_0 : i32, i32
  }
  func.func @transform_6(%arg0: i32) -> (i32, i32) {
    %c0_i32 = arith.constant 0 : i32
    %c0_i32_0 = arith.constant 0 : i32
    %c0_i32_1 = arith.constant 0 : i32
    return %c0_i32, %c0_i32_0 : i32, i32
  }
  func.func @transform_7(%arg0: i32) -> (i32, i32) {
    %c0_i32 = arith.constant 0 : i32
    %c0_i32_0 = arith.constant 0 : i32
    %c0_i32_1 = arith.constant 0 : i32
    return %c0_i32, %c0_i32_0 : i32, i32
  }
  func.func @transform_8(%arg0: i32) -> (i32, i32) {
    %c0_i32 = arith.constant 0 : i32
    %c0_i32_0 = arith.constant 0 : i32
    %c0_i32_1 = arith.constant 0 : i32
    return %c0_i32, %c0_i32_0 : i32, i32
  }
  func.func @transform_9(%arg0: i32) -> (i32, i32) {
    %c0_i32 = arith.constant 0 : i32
    %c0_i32_0 = arith.constant 0 : i32
    %c0_i32_1 = arith.constant 0 : i32
    return %c0_i32, %c0_i32_0 : i32, i32
  }
  func.func @transform_10(%arg0: i32) -> (i32, i32) {
    %c0_i32 = arith.constant 0 : i32
    %c0_i32_0 = arith.constant 0 : i32
    %c0_i32_1 = arith.constant 0 : i32
    return %c0_i32, %c0_i32_0 : i32, i32
  }
  func.func @transform_11(%arg0: i32) -> (i32, i32) {
    %c0_i32 = arith.constant 0 : i32
    %c0_i32_0 = arith.constant 0 : i32
    return %arg0, %c0_i32 : i32, i32
  }
}

</mosaic_0001>

<bundles_post_ra>
// kernel: tpu_custom_call.1
= control target key start
LH: loop header
LB: loop body
LE: loop exit
PB: predicated region body
PF: predicated region fallthrough
CT: control target
= control target key end

     0   :  { %v857_v1 = vmov 0   ;;  %vm82_vm0 = vcmask 261120   ;;  %vm246_vm1 = vcmask 1043456   ;;  %v47_v30 = vlaneseq  ;;  %s1135_s1 = inlined_call_operand.vmem [shape: bf16[32,200], index: 1, kind: input, shape index: {}]   ;;  %s1136_s0 = inlined_call_operand.vmem [shape: bf16[16,32], index: 0, kind: input, shape index: {}]   ;;  %s1137_s3 = inlined_call_operand.vmem [shape: bf16[200,100], index: 3, kind: input, shape index: {}]   ;;  %s1138_s5 = inlined_call_operand.vmem [shape: bf16[100,200], index: 5, kind: input, shape index: {}]   ;;  %s1139_s2 = inlined_call_operand.vmem [shape: f32[1,200], index: 2, kind: input, shape index: {}]   ;;  %s1140_s7 = inlined_call_operand.vmem [shape: bf16[200,50], index: 7, kind: input, shape index: {}]   ;;  %s1141_s4 = inlined_call_operand.vmem [shape: f32[1,100], index: 4, kind: input, shape index: {}]   ;;  %s1142_s9 = inlined_call_operand.vmem [shape: bf16[50,8], index: 9, kind: input, shape index: {}]   ;;  %s1143_s6 = inlined_call_operand.vmem [shape: f32[1,200], index: 6, kind: input, shape index: {}]   ;;  %s1144_s8 = inlined_call_operand.vmem [shape: f32[1,50], index: 8, kind: input, shape index: {}]   ;;  %s1145_s10 = inlined_call_operand.vmem [shape: f32[1,8], index: 10, kind: input, shape index: {}]   ;;  %s1146_s11 = inlined_call_operand.vmem [shape: f32[16,8], index: 11, kind: output, shape index: {}]  }
   0x1   :  { %v792_v0 = vld [vmem:[%s1135_s1 + $0x4] ss:$8 sps:$4 sm:$0xff]   ;;  %118 = vmatprep.mubr.bf16.mxu1 %v857_v1  ;;  %427 = vmatprep.mubr.bf16.mxu0 %v857_v1  ;;  %v794_v2 = vld [vmem:[%s1135_s1] ss:$8 sps:$4 sm:$0xff]   ;;  %v795_v3 = vld [vmem:[%s1135_s1 + $0x14] ss:$8 sps:$4 sm:$0xff]  }
   0x2   :  { %86 = vmatprep.subr.bf16.mxu1 %v792_v0  ;;  %v797_v4 = vld [vmem:[%s1135_s1 + $0x10] ss:$8 sps:$4 sm:$0xff]   ;;  %v798_v5 = vld [vmem:[%s1136_s0] sm:$0xff]   ;;  %v800_v7 = vld [vmem:[%s1137_s3 + $0x8] sm:$0xff]   ;;  %v1020_v31 = vshrl.u32 %v47_v30, 7  ;;  %vm242_vm2 = vcmask 588800  }
   0x3   :  { %87 = vmatpush1.bf16.msra.mxu1 %v794_v2  ;;  %v799_v6 = vld [vmem:[%s1137_s3] sm:$0xff]   ;;  %v801_v8 = vld [vmem:[%s1137_s3 + $0x10] sm:$0xff]   ;;  %v802_v9 = vld [vmem:[%s1137_s3 + $0x18] sm:$0xff]   ;;  %vm388_vm3 = vcmask 1041408   ;;  %vm384_vm4 = vcmask 818176   ;;  %vm640_vm5 = vcmask 1040384  }
   0x4   :  { %88 = vmatprep.subr.bf16.mxu1 %v795_v3  ;;  %v803_v10 = vld [vmem:[%s1137_s3 + $0x20] sm:$0xff]   ;;  %v804_v11 = vld [vmem:[%s1137_s3 + $0x28] sm:$0xff]   ;;  %v805_v12 = vld [vmem:[%s1137_s3 + $0x30] sm:$0xff]   ;;  %v49_v32 = vsub.s32 0, %v1020_v31  ;;  %v53_v34 = vsub.s32 1, %v1020_v31  ;;  %vm859_vm6 = vmmov 0  }
   0x5   :  { %v806_v13 = vld [vmem:[%s1137_s3 + $0x38] sm:$0xff]   ;;  %v807_v14 = vld [vmem:[%s1137_s3 + $0x40] sm:$0xff]   ;;  %v808_v15 = vld [vmem:[%s1137_s3 + $0x48] sm:$0xff]   ;;  %vm636_vm7 = vcmask 408576   ;;  %vm685_vm8 = vcmask 64512  }
   0x6   :  { %v809_v16 = vld [vmem:[%s1137_s3 + $0x50] sm:$0xff]   ;;  %v810_v17 = vld [vmem:[%s1137_s3 + $0x58] sm:$0xff]   ;;  %v811_v18 = vld [vmem:[%s1137_s3 + $0x60] ss:$0 sps:$4 sm:$0xff]  }
   0x7   :  { %89 = vmatpush1.bf16.msra.mxu1 %v797_v4  ;;  %v248_v19 = vsel %vm246_vm1, %v811_v18, 0  ;;  %v812_v20 = vld [vmem:[%s1138_s5 + $0x4] ss:$8 sps:$4 sm:$0xff]   ;;  %v814_v21 = vld [vmem:[%s1138_s5] ss:$8 sps:$4 sm:$0xff]   ;;  %v858_v18 = vmov 0.0  }
   0x8   :  { %250 = vmatprep.subr.bf16.mxu1 %v857_v1  ;;  %395 = vmatprep.subr.bf16.mxu0 %v812_v20  ;;  %v815_v22 = vld [vmem:[%s1138_s5 + $0x14] ss:$8 sps:$4 sm:$0xff]   ;;  %v817_v23 = vld [vmem:[%s1138_s5 + $0x10] ss:$8 sps:$4 sm:$0xff]   ;;  %v818_v24 = vld [vmem:[%s1138_s5 + $0x24] ss:$8 sps:$4 sm:$0xff]  }
   0x9   :  { %396 = vmatpush1.bf16.msra.mxu0 %v814_v21  ;;  %v820_v25 = vld [vmem:[%s1138_s5 + $0x20] ss:$8 sps:$4 sm:$0xff]   ;;  %v821_v26 = vld [vmem:[%s1138_s5 + $0x34] ss:$8 sps:$4 sm:$0xff]   ;;  %v823_v27 = vld [vmem:[%s1138_s5 + $0x30] ss:$8 sps:$4 sm:$0xff]  }
   0xa   :  { %719 = vmatmul.mubr.msk.bf16.vlgmr.msra.gmra.mrb[0].mxu1 %vm82_vm0, %v798_v5  ;;  %397 = vmatprep.subr.bf16.mxu0 %v815_v22  ;;  %v824_v28 = vld [vmem:[%s1138_s5 + $0x44] ss:$8 sps:$4 sm:$0xff]   ;;  %v826_v29 = vld [vmem:[%s1138_s5 + $0x40] ss:$8 sps:$4 sm:$0xff]   ;;  %v827_v51 = vld [vmem:[%s1138_s5 + $0x54] ss:$8 sps:$4 sm:$0xff]  }
   0xb   :  { %251 = vmatpush1.bf16.msra.mxu1 %v799_v6  ;;  %v45_v33 = vld [vmem:[%s1139_s2] sm:$0x3]  ;;  %v829_v52 = vld [vmem:[%s1138_s5 + $0x50] ss:$8 sps:$4 sm:$0xff]   ;;  %v833_v5 = vld [vmem:[%s1140_s7 + $0x8] sm:$0xff]  }
   0xc   :  { %252 = vmatprep.subr.bf16.mxu1 %v857_v1  ;;  %v50_v35 = vrot.slane %v45_v33, %v49_v32  ;;  %v54_v36 = vrot.slane %v45_v33, %v53_v34  ;;  %v306_v53 = vld [vmem:[%s1138_s5 + $0x60] sm:$0x33]  ;;  %v834_v6 = vld [vmem:[%s1140_s7 + $0x10] sm:$0xff]   ;;  %v846_v20 = vld [vmem:[%s1142_s9 + $0x8] sm:$0xff]  }
   0xd   :  { %398 = vmatpush1.bf16.msra.mxu0 %v817_v23  ;;  %v748_v54 = vcombine.high %v306_v53, %v306_v53  ;;  %v747_v55 = vcombine.low %v306_v53, %v306_v53  ;;  %v720_v57 = vld [vmem:[%s1141_s4] ss:$0 sm:$0xff]  ;;  %v847_v31 = vld [vmem:[%s1142_s9 + $0x10] sm:$0xff]  }
   0xe   :  { %399 = vmatprep.subr.bf16.mxu0 %v818_v24  ;;  %v832_v3 = vld [vmem:[%s1140_s7] sm:$0xff]  }
   0xf   :  { %253 = vmatpush1.bf16.msra.mxu1 %v800_v7  ;;  %v390_v56 = vsel %vm388_vm3, %v747_v55, 0  ;;  %v835_v7 = vld [vmem:[%s1140_s7 + $0x18] sm:$0xff]  }
  0x10   :  { %254 = vmatprep.subr.bf16.mxu1 %v857_v1 }
  0x11   :  { %400 = vmatpush1.bf16.msra.mxu0 %v820_v25 }
  0x12   :  { %401 = vmatprep.subr.bf16.mxu0 %v821_v26 }
  0x13   :  { %255 = vmatpush1.bf16.msra.mxu1 %v801_v8  ;;  %v836_v8 = vld [vmem:[%s1140_s7 + $0x20] sm:$0xff]  }
  0x14   :  { %256 = vmatprep.subr.bf16.mxu1 %v857_v1 }
  0x15   :  { %402 = vmatpush1.bf16.msra.mxu0 %v823_v27 }
  0x16   :  { %403 = vmatprep.subr.bf16.mxu0 %v824_v28 }
  0x17   :  { %257 = vmatpush1.bf16.msra.mxu1 %v802_v9  ;;  %v837_v9 = vld [vmem:[%s1140_s7 + $0x28] sm:$0xff]  }
  0x18   :  { %258 = vmatprep.subr.bf16.mxu1 %v857_v1 }
  0x19   :  { %404 = vmatpush1.bf16.msra.mxu0 %v826_v29 }
  0x1a   :  { %405 = vmatprep.subr.bf16.mxu0 %v827_v51 }
  0x1b   :  { %259 = vmatpush1.bf16.msra.mxu1 %v803_v10  ;;  %v838_v10 = vld [vmem:[%s1140_s7 + $0x30] sm:$0xff]  }
  0x1c   :  { %260 = vmatprep.subr.bf16.mxu1 %v857_v1 }
  0x1d   :  { %406 = vmatpush1.bf16.msra.mxu0 %v829_v52 }
  0x1e   :  { %749 = vmatprep.subr.msk.bf16.mxu0 %vm388_vm3, %v748_v54 }
  0x1f   :  { %261 = vmatpush1.bf16.msra.mxu1 %v804_v11  ;;  %v839_v11 = vld [vmem:[%s1140_s7 + $0x38] sm:$0xff]  }
  0x20   :  { %262 = vmatprep.subr.bf16.mxu1 %v857_v1 }
  0x21   :  { %408 = vmatpush1.bf16.msra.mxu0 %v390_v56 }
  0x22   :  { %557 = vmatprep.subr.bf16.mxu0 %v857_v1 }
  0x23   :  { %263 = vmatpush1.bf16.msra.mxu1 %v805_v12  ;;  %v840_v12 = vld [vmem:[%s1140_s7 + $0x40] sm:$0xff]  }
  0x24   :  { %264 = vmatprep.subr.bf16.mxu1 %v857_v1 }
  0x27   :  { %265 = vmatpush1.bf16.msra.mxu1 %v806_v13  ;;  %v841_v13 = vld [vmem:[%s1140_s7 + $0x48] sm:$0xff]  }
  0x28   :  { %266 = vmatprep.subr.bf16.mxu1 %v857_v1 }
  0x2b   :  { %267 = vmatpush1.bf16.msra.mxu1 %v807_v14  ;;  %v842_v14 = vld [vmem:[%s1140_s7 + $0x50] sm:$0xff]  }
  0x2c   :  { %268 = vmatprep.subr.bf16.mxu1 %v857_v1 }
  0x2f   :  { %269 = vmatpush1.bf16.msra.mxu1 %v808_v15  ;;  %v843_v15 = vld [vmem:[%s1140_s7 + $0x58] sm:$0xff]  }
  0x30   :  { %270 = vmatprep.subr.bf16.mxu1 %v857_v1 }
  0x33   :  { %271 = vmatpush1.bf16.msra.mxu1 %v809_v16  ;;  %v844_v16 = vld [vmem:[%s1140_s7 + $0x60] ss:$0 sps:$4 sm:$0xff]  }
  0x34   :  { %272 = vmatprep.subr.bf16.mxu1 %v857_v1 }
  0x37   :  { %273 = vmatpush1.bf16.msra.mxu1 %v810_v17  ;;  %v555_v17 = vsel %vm246_vm1, %v844_v16, 0 }
  0x38   :  { %274 = vmatprep.subr.bf16.mxu1 %v857_v1 }
  0x3b   :  { %275 = vmatpush1.bf16.msra.mxu1 %v248_v19  ;;  %v845_v19 = vld [vmem:[%s1142_s9] sm:$0xff]  }
  0x3c   :  { %777 = vmatprep.subr.bf16.mxu1 %v858_v18 }
  0xdd   :  { %v120_v37 = vpop.f32.mrb[0].mxu1 }
  0xde   :  { %v121_v38 = vadd.f32 %v120_v37, %v50_v35  ;;  %v122_v39 = vpop.f32.mrb[1].mxu1 }
  0xdf   :  { %v123_v40 = vadd.f32 %v122_v39, %v54_v36  ;;  %v124_v41 = vpop.f32.mrb[2].mxu1 }
  0xe0   :  { %v125_v42 = vadd.f32 %v124_v41, %v50_v35  ;;  %v126_v43 = vpop.f32.mrb[3].mxu1  ;;  %v129_v45 = vmax.f32 %v121_v38, 0.0 }
  0xe1   :  { %v127_v44 = vadd.f32 %v126_v43, %v54_v36  ;;  %v130_v47 = vmax.f32 %v123_v40, 0.0  ;;  %v751_v40 = vld [vmem:[%s1144_s8] ss:$0 sm:$0xff] }
  0xe2   :  { %v131_v46 = vmax.f32 %v125_v42, 0.0 }
  0xe3   :  { %v132_v48 = vmax.f32 %v127_v44, 0.0 }
  0xe4   :  { %v133_v49 = vpack.c.bf16 %v131_v46, %v129_v45 }
  0xe5   :  { %v134_v50 = vpack.c.bf16 %v132_v48, %v130_v47 }
  0xe7   :  { %734 = vmatprep.mubr.msk.bf16.mxu1 %vm242_vm2, %v134_v50  ;;  %v766_v50 = vld [vmem:[%s1145_s10] ss:$0 sm:$0xff] }
  0xe8   :  { %283 = vmatmul.mubr.bf16.vlgmr.msra.gmra.mrb[4].mxu1 %v133_v49 }
  0xe9   :  { %778 = vmatpush3.bf16.msra.mxu1 %v845_v19  ;;  %785 = vmatprep.mubr.msk.bf16.mxu1 %vm859_vm6, %v858_v18 }
  0xea   :  { %779 = vmatprep.subr.bf16.mxu1 %v858_v18 }
  0xed   :  { %780 = vmatpush3.bf16.msra.mxu1 %v846_v20 }
  0xee   :  { %781 = vmatprep.subr.bf16.mxu1 %v858_v18 }
  0xf1   :  { %782 = vmatpush3.bf16.msra.mxu1 %v847_v31 }
  0xf2   :  { %783 = vmatprep.subr.bf16.mxu1 %v858_v18 }
 0x1bb   :  { %v284_v58 = vpop.f32.mrb[4].mxu1 }
 0x1bc   :  { %v285_v59 = vadd.f32 %v720_v57, %v284_v58  ;;  %v286_v60 = vpop.f32.mrb[5].mxu1 }
 0x1bd   :  { %v287_v61 = vpop.f32.mrb[6].mxu1 }
 0x1be   :  { %v288_v62 = vadd.f32 %v720_v57, %v287_v61  ;;  %v289_v63 = vpop.f32.mrb[7].mxu1  ;;  %v291_v0 = vmax.f32 %v285_v59, 0.0 }
 0x1c0   :  { %v292_v2 = vmax.f32 %v288_v62, 0.0 }
 0x1c2   :  { %v293_v4 = vpack.c.bf16 %v292_v2, %v291_v0 }
 0x1c4   :  { %750 = vmatmul.mubr.msk.bf16.vlgmr.msra.gmra.mrb[0].mxu0 %vm384_vm4, %v293_v4 }
 0x1c5   :  { %558 = vmatpush1.bf16.msra.mxu0 %v832_v3 }
 0x1c6   :  { %559 = vmatprep.subr.bf16.mxu0 %v857_v1 }
 0x1c9   :  { %560 = vmatpush1.bf16.msra.mxu0 %v833_v5 }
 0x1ca   :  { %561 = vmatprep.subr.bf16.mxu0 %v857_v1 }
 0x1cd   :  { %562 = vmatpush1.bf16.msra.mxu0 %v834_v6 }
 0x1ce   :  { %563 = vmatprep.subr.bf16.mxu0 %v857_v1 }
 0x1d1   :  { %564 = vmatpush1.bf16.msra.mxu0 %v835_v7 }
 0x1d2   :  { %565 = vmatprep.subr.bf16.mxu0 %v857_v1 }
 0x1d5   :  { %566 = vmatpush1.bf16.msra.mxu0 %v836_v8 }
 0x1d6   :  { %567 = vmatprep.subr.bf16.mxu0 %v857_v1 }
 0x1d9   :  { %568 = vmatpush1.bf16.msra.mxu0 %v837_v9 }
 0x1da   :  { %569 = vmatprep.subr.bf16.mxu0 %v857_v1 }
 0x1dd   :  { %570 = vmatpush1.bf16.msra.mxu0 %v838_v10 }
 0x1de   :  { %571 = vmatprep.subr.bf16.mxu0 %v857_v1 }
 0x1e1   :  { %572 = vmatpush1.bf16.msra.mxu0 %v839_v11 }
 0x1e2   :  { %573 = vmatprep.subr.bf16.mxu0 %v857_v1 }
 0x1e5   :  { %574 = vmatpush1.bf16.msra.mxu0 %v840_v12 }
 0x1e6   :  { %575 = vmatprep.subr.bf16.mxu0 %v857_v1 }
 0x1e9   :  { %576 = vmatpush1.bf16.msra.mxu0 %v841_v13 }
 0x1ea   :  { %577 = vmatprep.subr.bf16.mxu0 %v857_v1 }
 0x1ed   :  { %578 = vmatpush1.bf16.msra.mxu0 %v842_v14 }
 0x1ee   :  { %579 = vmatprep.subr.bf16.mxu0 %v857_v1 }
 0x1f1   :  { %580 = vmatpush1.bf16.msra.mxu0 %v843_v15 }
 0x1f2   :  { %581 = vmatprep.subr.bf16.mxu0 %v857_v1  ;;  %v307_v1 = vld [vmem:[%s1143_s6] sm:$0x3] }
 0x1f3   :  { %v312_v21 = vrot.slane %v307_v1, %v49_v32  ;;  %v316_v22 = vrot.slane %v307_v1, %v53_v34  ;;  %v848_v32 = vld [vmem:[%s1142_s9 + $0x18] ss:$0 sps:$4 sm:$0x11]  }
 0x1f4   :  { %v642_v34 = vsel %vm640_vm5, %v848_v32, 0 }
 0x1f5   :  { %582 = vmatpush1.bf16.msra.mxu0 %v555_v17  ;;  %784 = vmatpush3.bf16.msra.mxu1 %v642_v34 }
 0x297   :  { %v429_v23 = vpop.f32.mrb[0].mxu0 }
 0x298   :  { %v430_v24 = vadd.f32 %v429_v23, %v312_v21  ;;  %v431_v25 = vpop.f32.mrb[1].mxu0 }
 0x299   :  { %v432_v26 = vadd.f32 %v431_v25, %v316_v22  ;;  %v433_v27 = vpop.f32.mrb[2].mxu0 }
 0x29a   :  { %v434_v28 = vadd.f32 %v433_v27, %v312_v21  ;;  %v435_v29 = vpop.f32.mrb[3].mxu0  ;;  %v438_v33 = vmax.f32 %v430_v24, 0.0 }
 0x29b   :  { %v436_v30 = vadd.f32 %v435_v29, %v316_v22  ;;  %v439_v36 = vmax.f32 %v432_v26, 0.0 }
 0x29c   :  { %v440_v35 = vmax.f32 %v434_v28, 0.0 }
 0x29d   :  { %v441_v37 = vmax.f32 %v436_v30, 0.0 }
 0x29e   :  { %v442_v38 = vpack.c.bf16 %v440_v35, %v438_v33 }
 0x29f   :  { %v443_v39 = vpack.c.bf16 %v441_v37, %v439_v36 }
 0x2a1   :  { %765 = vmatprep.mubr.msk.bf16.mxu0 %vm242_vm2, %v443_v39 }
 0x2a2   :  { %590 = vmatmul.mubr.bf16.vlgmr.msra.gmra.mrb[4].mxu0 %v442_v38 }
 0x375   :  { %v591_v41 = vpop.f32.mrb[4].mxu0 }
 0x376   :  { %v592_v42 = vadd.f32 %v751_v40, %v591_v41  ;;  %v593_v43 = vpop.f32.mrb[5].mxu0 }
 0x377   :  { %v594_v44 = vpop.f32.mrb[6].mxu0 }
 0x378   :  { %v595_v45 = vadd.f32 %v751_v40, %v594_v44  ;;  %v596_v46 = vpop.f32.mrb[7].mxu0  ;;  %v598_v47 = vmax.f32 %v592_v42, 0.0 }
 0x37a   :  { %v599_v48 = vmax.f32 %v595_v45, 0.0 }
 0x37c   :  { %v600_v49 = vpack.c.bf16 %v599_v48, %v598_v47 }
 0x37e   :  { %786 = vmatmul.mubr.msk.bf16.vlgmr.msra.gmra.mrb[8].mxu1 %vm636_vm7, %v600_v49 }
 0x451   :  { %v678_v51 = vpop.f32.mrb[8].mxu1 }
 0x452   :  { %v679_v52 = vadd.f32 %v766_v50, %v678_v51  ;;  %v787_v53 = vpop.f32.mrb[9].mxu1 }
 0x453   :  { %v681_v54 = vpop.f32.mrb[10].mxu1 }
 0x454   :  { %v682_v55 = vadd.f32 %v766_v50, %v681_v54  ;;  %v788_v56 = vpop.f32.mrb[11].mxu1  ;;  %v686_v57 = vsel %vm685_vm8, %v679_v52, -inf }
 0x455   :  { %687 = vmax.xlane.f32.xlu0 %v686_v57 }
 0x456   :  { %v689_v58 = vsel %vm685_vm8, %v682_v55, -inf }
 0x459   :  { %690 = vmax.xlane.f32.xlu0 %v689_v58 }
 0x4e2   :  { %v688_v59 = vpop.xlane.xlu0 %687 }
 0x4e3   :  { %v692_v60 = vsub.f32 %v679_v52, %v688_v59 }
 0x4e5   :  { %v694_v61 = vmul.f32 1.442695, %v692_v60 }
 0x4e6   :  { %v691_v62 = vpop.xlane.xlu0 %690 }
 0x4e7   :  { %849 = vpow2.f32 %v694_v61  ;;  %v693_v63 = vsub.f32 %v682_v55, %v691_v62 }
 0x4e9   :  { %v696_v0 = vmul.f32 1.442695, %v693_v63 }
 0x4eb   :  { %851 = vpow2.f32 %v696_v0 }
 0x4f1   :  { %v850_v2 = vpop.eup %849 }
 0x4f2   :  { %v698_v3 = vsel %vm685_vm8, %v850_v2, 0.0 }
 0x4f3   :  { %699 = vadd.xlane.f32.xlu1 %v698_v3 }
 0x4f5   :  { %v852_v4 = vpop.eup %851 }
 0x4f6   :  { %v701_v5 = vsel %vm685_vm8, %v852_v4, 0.0 }
 0x4f7   :  { %702 = vadd.xlane.f32.xlu1 %v701_v5 }
 0x580   :  { %v700_v6 = vpop.xlane.xlu1 %699 }
 0x581   :  { %853 = vrcp.f32 %v700_v6 }
 0x584   :  { %v703_v7 = vpop.xlane.xlu1 %702 }
 0x585   :  { %855 = vrcp.f32 %v703_v7 }
 0x58b   :  { %v854_v8 = vpop.eup %853 }
 0x58c   :  { %v706_v9 = vmul.f32 %v854_v8, %v850_v2 }
 0x58e   :  { %708 = vst.msk [vmem:[%s1146_s11] sm:$0xff] %vm685_vm8, %v706_v9 }
 0x58f   :  { %v856_v10 = vpop.eup %855 }
 0x590   :  { %v707_v11 = vmul.f32 %v856_v10, %v852_v4 }
 0x592   :  { %709 = vst.msk [vmem:[%s1146_s11 + $0x8] sm:$0xff] %vm685_vm8, %v707_v11 }

</bundles_post_ra>
